<compile_context>
chip_gen: v5e
topology: v5e:2x2
jax: 0.10.0
libtpu: 0.0.40
codegen_flags: <defaults>
</compile_context>

<pallas_src>
import numpy as np
import jax
import jax.numpy as jnp
from jax import lax
from jax.experimental import pallas as pl
from jax.experimental.pallas import tpu as pltpu


# ---------------------------------------------------------------------------
# Filter / operator construction (host side, deterministic, mirrors get_filter)
# ---------------------------------------------------------------------------
_FILTER_TABLE = {
    1: [1.0],
    2: [1.0, 1.0],
    3: [1.0, 2.0, 1.0],
    4: [1.0, 3.0, 3.0, 1.0],
    5: [1.0, 4.0, 6.0, 4.0, 1.0],
    6: [1.0, 5.0, 10.0, 10.0, 5.0, 1.0],
    7: [1.0, 6.0, 15.0, 20.0, 15.0, 6.0, 1.0],
}


def get_filter_1d(filt_size=3):
    return np.array(_FILTER_TABLE[filt_size], dtype=np.float64)


def _reflect_matrix(n, pad_lo, pad_hi):
    """(n+pad_lo+pad_hi, n) 0/1 operator R with R @ x == ReflectionPad1d(x)."""
    assert n >= 2 and pad_lo < n and pad_hi < n, "reflect pad needs pad < dim and dim >= 2"
    m = n + pad_lo + pad_hi
    R = np.zeros((m, n), np.float64)
    for i in range(m):
        j = i - pad_lo
        if j < 0:
            j = -j
        elif j >= n:
            j = 2 * (n - 1) - j
        R[i, j] = 1.0
    return R


def build_downsample_mats(h, w, filt_size=3, stride=2, pad_off=0):
    """Build (Ho, H) and (Wo, W) operators so that, on the UNPADDED plane x,

        out = Sh' @ x @ Sw'^T

    reproduces F.conv2d(ReflectionPad2d(pads)(x), (a (x) a)/sum, stride, groups=C).
    The reflect pad is folded into the matrices -> no jnp.pad, no extra HBM traffic.
    """
    a = get_filter_1d(filt_size)
    a = a / a.sum()                                  # (a/sum) (x) (a/sum) == (a(x)a)/sum2d
    p_lo = int(1.0 * (filt_size - 1) / 2) + pad_off
    p_hi = int(np.ceil(1.0 * (filt_size - 1) / 2)) + pad_off
    hp, wp = h + p_lo + p_hi, w + p_lo + p_hi
    ho = (hp - filt_size) // stride + 1
    wo = (wp - filt_size) // stride + 1
    Sh = np.zeros((ho, hp), np.float64)
    Sw = np.zeros((wo, wp), np.float64)
    for i in range(ho):
        Sh[i, i * stride:i * stride + filt_size] = a
    for j in range(wo):
        Sw[j, j * stride:j * stride + filt_size] = a
    Shf = Sh @ _reflect_matrix(h, p_lo, p_hi)        # (ho, h)
    Swf = Sw @ _reflect_matrix(w, p_lo, p_hi)        # (wo, w)
    return Shf.astype(np.float32), Swf.astype(np.float32)


# ---------------------------------------------------------------------------
# Pallas kernel: B (n, c) planes per grid step, both passes as single MXU matmuls
# ---------------------------------------------------------------------------
def downsample_kernel(x_ref, swt_ref, sh_ref, o_ref):
    # x_ref:   (B, H, W)   unpadded input planes (x.dtype)
    # swt_ref: (W, Wo)     column blur+stride+reflect operator, transposed
    # sh_ref:  (Ho, H)     row blur+stride+reflect operator
    # o_ref:   (B, Ho, Wo)
    B, H, W = x_ref.shape
    Wo = swt_ref.shape[1]
    Ho = sh_ref.shape[0]

    # W-pass: one large lane-contracting MXU matmul over all B planes at once.
    t = jnp.dot(x_ref[...].reshape(B * H, W), swt_ref[...],
                preferred_element_type=jnp.float32)              # (B*H, Wo) f32
    # H-pass operands in the operator dtype (bf16 MXU path when x is bf16).
    t = t.astype(sh_ref.dtype)

    if B == 1:
        u = jnp.dot(sh_ref[...], t, preferred_element_type=jnp.float32)   # (Ho, Wo)
        o_ref[0] = u.astype(o_ref.dtype)
    else:
        # Merge the B per-plane H-pass matmuls into ONE matmul with N = B*Wo:
        # lay planes side-by-side on the lane axis (static sublane slices + lane
        # concat; no XLU transpose), multiply once, store back with lane slices.
        planes = [t[b * H:(b + 1) * H, :] for b in range(B)]               # B x (H, Wo)
        t2 = jnp.concatenate(planes, axis=-1)                              # (H, B*Wo)
        u = jnp.dot(sh_ref[...], t2, preferred_element_type=jnp.float32)   # (Ho, B*Wo)
        for b in range(B):
            o_ref[b] = u[:, b * Wo:(b + 1) * Wo].astype(o_ref.dtype)


# ---------------------------------------------------------------------------
# Host-side sizing helpers
# ---------------------------------------------------------------------------
def _vmem_config():
    """(per-step block budget, vmem_limit_bytes), sized per TPU generation."""
    try:
        cap = int(getattr(pltpu.get_tpu_info(), "vmem_capacity_bytes", 0)) or (64 << 20)
    except Exception:
        cap = 64 << 20
    if cap >= (96 << 20):
        # v5e / v6e: 128 MiB physical VMEM -> bigger blocks, raise the scoped limit.
        return 24 << 20, 64 << 20
    # v7x: 64 MiB physical VMEM per TensorCore -> stay conservative.
    return 10 << 20, 48 << 20


def _pick_plane_batch(num_planes, h, w, ho, wo, in_bytes, out_bytes, op_bytes,
                      vmem_block_budget, max_b=64):
    """Largest plane batch B fitting the per-step VMEM budget.

    Accounts for double-buffered input/output blocks, the (constant, but
    double-buffered) operator matrices, and the f32 intermediates of both passes.
    """
    fixed = 2 * (w * wo + ho * h) * op_bytes                 # swt + sh operand blocks
    per_plane = (2 * h * w * in_bytes                        # double-buffered input block
                 + 2 * ho * wo * out_bytes                   # double-buffered output block
                 + h * wo * (4 + 2 * op_bytes)               # t (f32) + cast/concat copies
                 + ho * wo * (4 + out_bytes))                # u (f32) + cast before store
    avail = max(vmem_block_budget - fixed, per_plane)
    b = int(max(1, min(num_planes, max_b, avail // per_plane)))
    # Keep >= ~8 grid steps: lets the "parallel" axis shard across v7x's two
    # TensorCores and gives the software pipeline some depth.
    b = min(b, max(1, num_planes // 8))
    return b


def _exact_in(mat, dtype):
    """True if the float32 matrix `mat` is exactly representable in `dtype`."""
    dt = np.dtype(dtype)
    if dt == np.dtype(np.float32):
        return True
    try:
        cast = mat.astype(dt).astype(np.float32)
    except Exception:
        return False
    return np.array_equal(cast, mat.astype(np.float32))


def downsample(x, filt_size=3, stride=2, pad_off=0):
    """Pallas equivalent of Downsample(channels, 'reflect', filt_size, stride, pad_off)."""
    # TODO(synk): pad_type 'replicate'/'zero' and the filt_size==1 pure-slicing branch
    # are not implemented (only the module's default reflect / filt_size>=2 path).
    assert filt_size >= 2, "filt_size==1 slicing branch not implemented"
    N, C, H, W = x.shape
    Shf, Swf = build_downsample_mats(H, W, filt_size, stride, pad_off)
    Ho, Wo = Shf.shape[0], Swf.shape[0]
    NC = N * C

    x_flat = x.reshape(NC, H, W)                      # contiguous; free
    in_bytes = x.dtype.itemsize

    # Operator dtype: x.dtype when the folded binomial weights are exact in it
    # (dyadic fractions -> exact in bf16/f16 for filt_size<=7), else f32 fallback.
    swt_np = np.ascontiguousarray(Swf.T)              # (W, Wo)
    if _exact_in(swt_np, x.dtype) and _exact_in(Shf, x.dtype):
        op_dtype = x.dtype
    else:
        op_dtype = np.dtype(np.float32)
    op_bytes = np.dtype(op_dtype).itemsize

    block_budget, vmem_limit = _vmem_config()
    B = _pick_plane_batch(NC, H, W, Ho, Wo, in_bytes, in_bytes, op_bytes, block_budget)

    # Keep the in-kernel (B,H,W)->(B*H,W) reshape a no-op: if H is not a multiple of
    # the sublane tile, fall back to B=1 (the reshape is then a pure squeeze).
    sublane = {1: 32, 2: 16}.get(in_bytes, 8)
    if H % sublane:
        B = 1

    grid = (pl.cdiv(NC, B),)                          # masked last block if NC % B != 0

    swt = jnp.asarray(swt_np, dtype=op_dtype)         # (W, Wo)
    sh = jnp.asarray(Shf, dtype=op_dtype)             # (Ho, H)

    flops = 2 * NC * Wo * H * (W + Ho)
    bytes_accessed = (NC * H * W * in_bytes + NC * Ho * Wo * in_bytes
                      + W * Wo * op_bytes + Ho * H * op_bytes)

    out = pl.pallas_call(
        downsample_kernel,
        out_shape=jax.ShapeDtypeStruct((NC, Ho, Wo), x.dtype),
        grid=grid,
        in_specs=[
            pl.BlockSpec((B, H, W), lambda i: (i, 0, 0)),
            pl.BlockSpec((W, Wo), lambda i: (0, 0)),
            pl.BlockSpec((Ho, H), lambda i: (0, 0)),
        ],
        out_specs=pl.BlockSpec((B, Ho, Wo), lambda i: (i, 0, 0)),
        compiler_params=pltpu.CompilerParams(
            dimension_semantics=("parallel",),        # shards across v7x's 2 TCs
            vmem_limit_bytes=vmem_limit,
        ),
        cost_estimate=pl.CostEstimate(
            flops=flops, transcendentals=0, bytes_accessed=bytes_accessed),
    )(x_flat, swt, sh)
    return out.reshape(N, C, Ho, Wo)


# ---------------------------------------------------------------------------
# Pure-JAX reference (matches F.conv2d(self.pad(inp), filt, stride, groups=C))
# ---------------------------------------------------------------------------
def ref_downsample(x, filt_size=3, stride=2):
    N, C, H, W = x.shape
    a = get_filter_1d(filt_size)
    filt2d = a[:, None] * a[None, :]
    filt2d = (filt2d / filt2d.sum()).astype(np.float32)
    w = jnp.asarray(np.tile(filt2d[None, None], (C, 1, 1, 1)))   # (C, 1, k, k)
    p_lo = int(1.0 * (filt_size - 1) / 2)
    p_hi = int(np.ceil(1.0 * (filt_size - 1) / 2))
    xp = jnp.pad(x, ((0, 0), (0, 0), (p_lo, p_hi), (p_lo, p_hi)), mode="reflect")
    return lax.conv_general_dilated(
        xp, w, window_strides=(stride, stride), padding="VALID",
        feature_group_count=C, dimension_numbers=("NCHW", "OIHW", "NCHW"))


if __name__ == "__main__":
    key = jax.random.PRNGKey(0)
    k1, k2 = jax.random.split(key)

    # Primary case (module-sized small input).
    x = jax.random.normal(k1, (2, 4, 16, 16), dtype=jnp.float32)
    out = jax.block_until_ready(downsample(x))
    ref = jax.block_until_ready(ref_downsample(x))
    assert out.shape == (2, 4, 8, 8), out.shape
    np.testing.assert_allclose(np.asarray(out), np.asarray(ref), rtol=1e-5, atol=1e-5)

    # Also exercise the batched (B > 1) merged H-pass path.
    x2 = jax.random.normal(k2, (2, 8, 16, 16), dtype=jnp.float32)
    out2 = jax.block_until_ready(downsample(x2))
    ref2 = jax.block_until_ready(ref_downsample(x2))
    assert out2.shape == (2, 8, 8, 8), out2.shape
    np.testing.assert_allclose(np.asarray(out2), np.asarray(ref2), rtol=1e-5, atol=1e-5)

    print("KERNEL_OK")
</pallas_src>

<mosaic_0001>
module attributes {stable_mosaic.version = 11 : i64} {
  func.func @downsample_kernel(%arg0: i32, %arg1: memref<1x16x16xf32, #tpu.memory_space<vmem>>, %arg2: memref<16x8xf32, #tpu.memory_space<vmem>>, %arg3: memref<8x16xf32, #tpu.memory_space<vmem>>, %arg4: memref<1x8x8xf32, #tpu.memory_space<vmem>>) attributes {dimension_semantics = [#tpu.dimension_semantics<parallel>], iteration_bounds = array<i64: 8>, scalar_prefetch = 0 : i64, scratch_operands = 0 : i64, tpu.core_type = #tpu.core_type<tc>, window_params = [{transform_indices = @transform_0, window_bounds = array<i64: 1, 16, 16>}, {pipeline_mode = #tpu.pipeline_mode<synchronous>, transform_indices = @transform_1, window_bounds = array<i64: 16, 8>}, {pipeline_mode = #tpu.pipeline_mode<synchronous>, transform_indices = @transform_2, window_bounds = array<i64: 8, 16>}, {transform_indices = @transform_3, window_bounds = array<i64: 1, 8, 8>}]} {
    %c0 = arith.constant 0 : index
    %c0_0 = arith.constant 0 : index
    %c0_1 = arith.constant 0 : index
    %0 = vector.load %arg1[%c0, %c0_0, %c0_1] : memref<1x16x16xf32, #tpu.memory_space<vmem>>, vector<1x16x16xf32>
    %1 = vector.shape_cast %0 : vector<1x16x16xf32> to vector<16x16xf32>
    %c0_2 = arith.constant 0 : index
    %c0_3 = arith.constant 0 : index
    %2 = vector.load %arg2[%c0_2, %c0_3] : memref<16x8xf32, #tpu.memory_space<vmem>>, vector<16x8xf32>
    %cst = arith.constant dense<0.000000e+00> : vector<16x8xf32>
    %3 = tpu.matmul %1, %2, %cst {dimension_numbers = #tpu.dot_dimension_numbers<[1], [0], [0], [1], [0, 0, 1, 1], [], []>} : vector<16x16xf32>, vector<16x8xf32>, vector<16x8xf32> -> vector<16x8xf32>
    %c0_4 = arith.constant 0 : index
    %c0_5 = arith.constant 0 : index
    %4 = vector.load %arg3[%c0_4, %c0_5] : memref<8x16xf32, #tpu.memory_space<vmem>>, vector<8x16xf32>
    %cst_6 = arith.constant dense<0.000000e+00> : vector<8x8xf32>
    %5 = tpu.matmul %4, %3, %cst_6 {dimension_numbers = #tpu.dot_dimension_numbers<[1], [0], [0], [1], [0, 0, 1, 1], [], []>} : vector<8x16xf32>, vector<16x8xf32>, vector<8x8xf32> -> vector<8x8xf32>
    %c0_7 = arith.constant 0 : index
    %c0_8 = arith.constant 0 : index
    %c0_9 = arith.constant 0 : index
    %6 = vector.load %arg4[%c0_7, %c0_8, %c0_9] : memref<1x8x8xf32, #tpu.memory_space<vmem>>, vector<1x8x8xf32>
    %7 = vector.shape_cast %6 : vector<1x8x8xf32> to vector<8x8xf32>
    %8 = vector.shape_cast %5 : vector<8x8xf32> to vector<1x8x8xf32>
    tpu.vector_store %arg4[%c0_7, %c0_8, %c0_9], %8 {strides = array<i32>} : memref<1x8x8xf32, #tpu.memory_space<vmem>>, vector<1x8x8xf32>,
    return
  }
  func.func @transform_0(%arg0: i32) -> (i32, i32, i32) {
    %c0_i32 = arith.constant 0 : i32
    %c0_i32_0 = arith.constant 0 : i32
    %c0_i32_1 = arith.constant 0 : i32
    return %arg0, %c0_i32, %c0_i32_0 : i32, i32, i32
  }
  func.func @transform_1(%arg0: i32) -> (i32, i32) {
    %c0_i32 = arith.constant 0 : i32
    %c0_i32_0 = arith.constant 0 : i32
    %c0_i32_1 = arith.constant 0 : i32
    return %c0_i32, %c0_i32_0 : i32, i32
  }
  func.func @transform_2(%arg0: i32) -> (i32, i32) {
    %c0_i32 = arith.constant 0 : i32
    %c0_i32_0 = arith.constant 0 : i32
    %c0_i32_1 = arith.constant 0 : i32
    return %c0_i32, %c0_i32_0 : i32, i32
  }
  func.func @transform_3(%arg0: i32) -> (i32, i32, i32) {
    %c0_i32 = arith.constant 0 : i32
    %c0_i32_0 = arith.constant 0 : i32
    %c0_i32_1 = arith.constant 0 : i32
    return %arg0, %c0_i32, %c0_i32_0 : i32, i32, i32
  }
}

</mosaic_0001>

<bundles_post_ra>
// kernel: tpu_custom_call.1
= control target key start
LH: loop header
LB: loop body
LE: loop exit
PB: predicated region body
PF: predicated region fallthrough
CT: control target
= control target key end

     0   :  { %8 = vsyncpa [#allocation3], 0  ;;  %s659_s0 = inlined_call_operand.hbm [shape: f32[8,16,16], index: 0, kind: input, shape index: {}]   ;;  %s660_s1 = inlined_call_operand.vmem [shape: f32[16,8], index: 1, kind: input, shape index: {}]   ;;  %s661_s2 = inlined_call_operand.vmem [shape: f32[8,16], index: 2, kind: input, shape index: {}]   ;;  %s662_s3 = inlined_call_operand.hbm [shape: f32[8,8,8], index: 3, kind: output, shape index: {}]  }
   0x1   :  { %10 = vsyncpa [#allocation3 + $0x1], 0 }
   0x2   :  { %11 = vsyncpa [#allocation4], 0 }
   0x3   :  { %13 = vsyncpa [#allocation4 + $0x1], 0  ;;  %s524_s12 = smov 0   ;;  %s526_s13 = smov 0  }
   0x4   :  { %s528_s14 = smov 0   ;;  %s530_s15 = smov 0  }
   0x5 LB: > { %s545_s16 = sadd.s32 4294967295, %s500_s15   ;;  %s337_s17 = sadd.s32 4294967294, %s500_s15   ;;  %s500_s15 = sphi %s530_s15, %s671_s15   ;;  %s496_s14 = sphi %s528_s14, %s670_s14   ;;  %s492_s13 = sphi %s526_s13, %s669_s13   ;;  %s488_s12 = sphi %s524_s12, %s668_s12  }
   0x6   : > { %s549_s18 = sadd.s32 1, %s500_s15   ;;  %s26_s19 = sadd.s32 1, %s496_s14 }
   0x7   : > { %s23_s20 = ssub.s32 %s500_s15, %s549_s18  ;;  %p33_p0 = scmp.ne.s32.totalorder %s496_s14, %s492_s13 }
   0x8   : > { %p24_p1 = scmp.eq.s32.totalorder %s23_s20, 0  ;;  %p34_p2 = scmp.eq.s32.totalorder %s500_s15, 0 }
   0x9   : > { %p39_p3 = scmp.ne.s32.totalorder %s492_s13, %s488_s12  ;;  %p40_p4 = scmp.eq.s32.totalorder %s545_s16, 0 }
   0xa   : > { %s561_s21 = scalar_select %p24_p1, %s496_s14, %s26_s19  }
   0xb   : > { %p563_p5 = por %p34_p2, %p33_p0  ;;  %p567_p6 = por %p40_p4, %p39_p3 }
   0xc   : > { %p105_p7 = scmp.eq.s32.totalorder %s545_s16, 7  ;;  %p111_p8 = scmp.eq.s32.totalorder %s337_s17, 7 }
   0xd   : > { %p368_p9 = scmp.lt.s32.totalorder %s500_s15, 8  ;;  %s137_s26 = sand.u32 1, %s496_s14  }
   0xe   : > { %p573_p10 = por %p105_p7, %p33_p0  ;;  %p577_p11 = por %p111_p8, %p39_p3 }
   0xf   : > { %s353_s27 = sshll.u32 %s500_s15, 4  ;;  %s340_s28 = sshll.u32 %s137_s26, 4 }
  0x10   : > { %s146_s4 = scalar_lea.hbm %s659_s0, %s353_s27  ;;  %s141_s6 = scalar_lea.vmem [#allocation2], %s340_s28 }
  0x11   : > { %s147_s5 = sshll.u32 %s146_s4, 4  ;;  %s149_s7 = sshll.u32 %s141_s6, 4  ;;  %s148_s5 = int_to_ptr.hbm [resolvable:$true] %s147_s5  ;;  %s150_s7 = int_to_ptr.vmem [resolvable:$true] %s149_s7 }
  0x12   : > { %p588_p12 = pnand %p368_p9, %p563_p5  ;;  %p343_p13 = scmp.ge.s32.totalorder %s500_s15, 1 }
  0x13   : > { %p157_p0 = scmp.lt.s32.totalorder %s500_s15, 9  ;;  %s138_s9 = scalar_lea.sflag [#allocation3], %s137_s26 }
  0x14   : > { %s404_s10 = sshra.s32 %s148_s5, 4  ;;  %p408_p2 = pneg %p588_p12  ;;  %s405_s10 = int_to_ptr.hbm [resolvable:$true] %s404_s10 }
  0x15   : > { %s406_s11 = scalar_lea.hbm %s405_s10, 16  ;;  %s411_s20 = scalar_lea.hbm %s659_s0, 128 }
  0x16   : > { %p407_p1 = scmp.ne.s32.totalorder %s405_s10, %s406_s11  ;;  %p412_p5 = scmp.lt.s32.totalorder %s405_s10, %s659_s0 }
  0x17   : > { %p413_p7 = scmp.lt.s32.totalorder %s411_s20, %s406_s11 }
  0x18   : > { %p409_p3 = pnand %p408_p2, %p407_p1 }
  0x19   : > { %p414_p8 = por %p413_p7, %p412_p5 }
  0x1a   : > { %p410_p4 = pneg %p409_p3 }
  0x1c   : > { %p415_p9 = pnand %p414_p8, %p410_p4 }
  0x1e   : > { %418 = shalt.err (!%p415_p9)
}
  0x1f   : > { %s502_s26 = smov 128   ;;  %s503_s28 = smov 8  }
  0x20   : > { %363 = dma.hbm_to_vmem [thread:$0]  (!%p588_p12), %s148_s5, 256, %s150_s7, %s138_s9, %s502_s26, %s502_s26, %s503_s28  }
  0x21   : > { %p158_p1 = pnand %p343_p13, %p157_p0 }
  0x22   : > { %s609_s29 = sand.u32 (!%p158_p1), 1, %s492_s13  }
  0x23   : > { %161 = sbr.rel (%p158_p1) target bundleno = 309 (0x135), region = 32  ;;  %s344_s30 = sshll.u32 (!%p158_p1), %s609_s29, 4 }
  0x24   : > { %s164_s4 = scalar_lea.sflag (!%p158_p1), [#allocation3], %s609_s29  ;;  %s167_s6 = scalar_lea.vmem (!%p158_p1), [#allocation2], %s344_s30 }
  0x28   : > { %479 = dma.done.wait (%p567_p6), %s164_s4, 256  }
  0x29   : > { %481 = vsyncadd (%p567_p6), %s164_s4, 4294967040  ;;  %v194_v0 = vld [vmem:[%s660_s1 + $0x8] sm:$0xff]  ;;  %v193_v1 = vld [vmem:[%s660_s1] sm:$0xff]  ;;  %vm195_vm0 = vcmask 130048   ;;  %s345_s11 = sshll.u32 %s609_s29, 3  ;;  %s350_s17 = sshll.u32 %s545_s16, 3 }
  0x2a   : > { %354 = vmatpush.msra.mxu2 %v194_v0  ;;  %v192_v2 = vld [vmem:[%s167_s6 + $0x8] sm:$0xff]  ;;  %216 = vmatpush.msra.mxu0 %v194_v0  ;;  %v191_v3 = vld [vmem:[%s167_s6] sm:$0xff]  ;;  %s262_s22 = scalar_lea.hbm %s662_s3, %s350_s17  ;;  %s190_s27 = scalar_lea.vmem [#allocation5], %s345_s11  ;;  %vm249_vm1 = vcmask 64512  }
  0x2b   : > { %v225_v6 = vld [vmem:[%s661_s2] sm:$0xff]  ;;  %s264_s26 = sshll.u32 %s190_s27, 4  ;;  %s266_s28 = sshll.u32 %s262_s22, 4  ;;  %s265_s26 = int_to_ptr.vmem [resolvable:$true] %s264_s26  ;;  %s267_s28 = int_to_ptr.hbm [resolvable:$true] %s266_s28 }
  0x2c   : > { %355 = vmatpush.msra.mxu2 %v193_v1  ;;  %217 = vmatpush.msra.mxu0 %v193_v1  ;;  %s252_s30 = scalar_lea.sflag [#allocation4], %s609_s29  ;;  %s448_s4 = sshra.s32 %s267_s28, 4  ;;  %s449_s4 = int_to_ptr.hbm [resolvable:$true] %s448_s4 }
  0x2d   : > { %347 = vmatmul.msk.f32.vlgmr.msra.gmra.mxu2 %vm195_vm0, %v192_v2  ;;  %346 = vmatmul.msk.f32.vlgmr.msra.gmra.mxu0 %vm195_vm0, %v191_v3  ;;  %s450_s6 = scalar_lea.hbm %s449_s4, 8  ;;  %s454_s5 = scalar_lea.hbm %s662_s3, 64 }
  0x2e   : > { %p451_p6 = scmp.ne.s32.totalorder %s449_s4, %s450_s6  ;;  %p455_p0 = scmp.lt.s32.totalorder %s449_s4, %s662_s3 }
  0x2f   : > { %p456_p2 = scmp.lt.s32.totalorder %s454_s5, %s450_s6 }
  0x30   : > { %p452_p12 = pnand %p451_p6, %p573_p10 }
  0x31   : > { %p457_p3 = por %p456_p2, %p455_p0 }
  0x32   : > { %p453_p13 = pneg %p452_p12 }
  0x34   : > { %p458_p4 = pnand %p457_p3, %p453_p13 }
  0xaa   : > { %v219_v5 = vpop.f32.mrf.mxu0 }
  0xb0   : > { %v222_v4 = vpop.f32.mrf.mxu2 }
  0xb1   : > { %243 = vmatpush.msra.mxu1 %v222_v4 }
  0xb3   : > { %244 = vmatpush.msra.mxu1 %v219_v5 }
  0xb4   : > { %348 = vmatmul.msk.f32.vlgmr.msra.gmra.mxu1 %vm195_vm0, %v225_v6 }
 0x131   : > { %v246_v7 = vpop.f32.mrf.mxu1 }
 0x132   : > { %250 = vst.msk [vmem:[%s190_s27] sm:$0xff] %vm249_vm1, %v246_v7 }
 0x133   : > { %461 = shalt.err (!%p458_p4)
}
 0x134   : > { %358 = dma.vmem_to_hbm [thread:$0]  (%p573_p10), %s265_s26, 128, %s267_s28, %s252_s30  }
 0x135 PF: > { %p369_p5 = scmp.ge.s32.totalorder %s500_s15, 2  ;;  %s278_s29 = sand.u32 1, %s488_s12  }
 0x136   : > { %s279_s23 = scalar_lea.sflag [#allocation4], %s278_s29 }
 0x137   : > { %p365_p7 = pnand %p369_p5, %p577_p11 }
 0x139   : > { %p366_p8 = pneg %p365_p7 }
 0x13b   : > { %483 = dma.done.wait (%p366_p8), %s279_s23, 128  }
 0x13c   : > { %485 = vsyncadd (%p366_p8), %s279_s23, 4294967168  ;;  %p16_p9 = scmp.ge.s32.totalorder %s549_s18, 10   ;;  %s668_s12 = smov %s492_s13 }
 0x13d   : > { %s669_s13 = smov %s496_s14  ;;  %s670_s14 = smov %s561_s21 }
 0x13e   : > { %s671_s15 = smov %s549_s18  ;;  %18 = sbr.rel (!%p16_p9) target bundleno = 5 (0x5), region = 77 }
 0x143   :  { %285 = vsyncpa [#allocation3], 1 }
 0x144   :  { %287 = vsyncpa [#allocation3 + $0x1], 1 }
 0x145   :  { %288 = vsyncpa [#allocation4], 1 }
 0x146   :  { %290 = vsyncpa [#allocation4 + $0x1], 1 }

</bundles_post_ra>
